<compile_context>
chip_gen: v7x
topology: tpu7x:2x2x1
jax: 0.10.0
libtpu: 0.0.40
codegen_flags: <defaults>
</compile_context>

<pallas_src>
from functools import partial

import jax
import jax.numpy as jnp
from jax.experimental import pallas as pl
from jax.experimental.pallas import tpu as pltpu

LANE = 128
_BN_EPS = 1e-5
_NEG = -1e30  # pad-logit value: excluded from log_softmax via exp underflow


def _round8(n):
    return ((n + 7) // 8) * 8


# ------------------------------ fused kernel ------------------------------
def _make_kernel(B, T, V_in, H, offs):
    four_h = 4 * H
    OFF_WX, OFF_WHH, OFF_B, OFF_W1, OFF_B1, OFF_W2, OFF_B2 = offs

    def kernel(ids_ref, slab_ref, mask_ref, out_ref):
        # Static, sublane(8)-aligned views of the single packed parameter slab
        # (one DMA for all 7 parameter tensors instead of 7 descriptors).
        wx = slab_ref[OFF_WX:OFF_WX + V_in, :]          # [V_in, 4H] = embedding @ W_ih
        whh = slab_ref[OFF_WHH:OFF_WHH + H, :]          # [H, 4H]
        b_l = slab_ref[OFF_B:OFF_B + 1, :]              # [1, 4H]
        w1 = slab_ref[OFF_W1:OFF_W1 + H, :]             # [H, 128]   (BN folded, lane-padded)
        b1 = slab_ref[OFF_B1:OFF_B1 + 1, :]             # [1, 128]
        w2 = slab_ref[OFF_W2:OFF_W2 + LANE, :]          # [128, 128] (zero-padded rows/cols)
        b2 = slab_ref[OFF_B2:OFF_B2 + 1, :]             # [1, 128]   (pad cols = -1e30)

        # ---- Input projection hoisted out of the recurrence ----
        # One-hot for all T steps at once -> ONE matmul (M = T*B), bias folded here.
        ids_col = ids_ref[...]                                           # [T*B, 1] int32
        iota_v = jax.lax.broadcasted_iota(jnp.int32, (T * B, V_in), 1)
        onehot = (iota_v == ids_col).astype(jnp.float32)                 # [T*B, V_in]
        x_proj = (jnp.dot(onehot, wx, preferred_element_type=jnp.float32)
                  + b_l)                                                 # [T*B, 4H]

        h = jnp.zeros((B, H), jnp.float32)
        c = jnp.zeros((B, H), jnp.float32)

        # T is small & static: fully unrolled; h/c stay in vregs across steps.
        # Per-step serial chain is now: h @ whh -> sigmoid/tanh -> elementwise.
        for t in range(T):
            xt = x_proj[t * B:(t + 1) * B, :]            # sublane-tile-aligned static slice
            gates = xt + jnp.dot(h, whh, preferred_element_type=jnp.float32)  # [B, 4H]
            sig = jax.nn.sigmoid(gates)                  # one full-vreg EUP pass
            th = jnp.tanh(gates)                         # one full-vreg EUP pass
            # NOTE: at H=32 the 3 lane-rotates implied by the f/g/o slices are a floor;
            # i*g, f*c, o*tanh(c) each pair values from different 32-lane blocks, so
            # permuting gate columns cannot co-locate the operands (PyTorch order i,f,g,o).
            i_g = sig[:, 0 * H:1 * H]
            f_g = sig[:, 1 * H:2 * H]
            g_g = th[:, 2 * H:3 * H]
            o_g = sig[:, 3 * H:4 * H]
            c = f_g * c + i_g * g_g
            h = o_g * jnp.tanh(c)

        # ---- Head (eval mode): Linear (BN folded) -> ReLU -> Linear, lane-dense 128.
        # Dropout is a no-op in eval.  Pad lanes: w1/b1/w2 pads are zero (exact),
        # b2 pad = -1e30 so pad logits vanish from the LSE.
        z = jnp.dot(h, w1, preferred_element_type=jnp.float32) + b1      # [B, 128]
        a = jnp.maximum(z, 0.0)
        logits = jnp.dot(a, w2, preferred_element_type=jnp.float32) + b2  # [B, 128]
        logits = logits * mask_ref[...]                  # multiplicative mask (matches module)
        m = jnp.max(logits, axis=1, keepdims=True)
        lse = jnp.log(jnp.sum(jnp.exp(logits - m), axis=1, keepdims=True)) + m
        out_ref[...] = logits - lse                      # single lane-dense [B, 128] store

    return kernel


def _fused_call(ids_col, slab, maskp, *, B, T, V_in, H, offs):
    four_h = 4 * H
    kernel = _make_kernel(B, T, V_in, H, offs)

    def full(shape):
        return pl.BlockSpec(shape, lambda: (0,) * len(shape))

    flops = int(2 * T * B * V_in * four_h                       # hoisted input projection
                + T * (2 * B * H * four_h + 12 * B * H)         # recurrence
                + 2 * B * H * LANE + 2 * B * LANE * LANE        # head matmuls
                + 8 * B * LANE)                                 # log_softmax etc.
    transcendentals = int(T * (2 * B * four_h + B * H) + B * LANE)
    bytes_accessed = int(ids_col.size * ids_col.dtype.itemsize
                         + slab.size * slab.dtype.itemsize
                         + maskp.size * maskp.dtype.itemsize
                         + B * LANE * 4)

    return pl.pallas_call(
        kernel,
        out_shape=jax.ShapeDtypeStruct((B, LANE), jnp.float32),
        grid_spec=pltpu.PrefetchScalarGridSpec(
            num_scalar_prefetch=0,
            grid=(),                                   # single invocation: ~130 KB working set
            in_specs=[full(ids_col.shape), full(slab.shape), full(maskp.shape)],
            out_specs=full((B, LANE)),
        ),
        cost_estimate=pl.CostEstimate(
            flops=flops, transcendentals=transcendentals, bytes_accessed=bytes_accessed),
    )(ids_col, slab, maskp)


# --------------------------- one-time parameter prep ---------------------------
def prepare_params(params):
    """Cache the result and reuse across forward calls (exact up to f32 rounding):
       - fold the embedding lookup into the LSTM input projection (wx = embedding @ W_ih)
       - fold eval-mode BatchNorm into the first head Linear
       - pad head dims to 128 lanes; pad output-logit bias to -1e30
       - pack all 7 parameter tensors into one [R, 128] f32 slab (single prologue DMA)."""
    emb = params["embedding"].astype(jnp.float32)
    V_in, _E = emb.shape
    H = params["w_hh"].shape[0]
    four_h = 4 * H
    V_out = params["w2"].shape[1]
    if four_h != LANE or V_out > LANE or H > LANE:
        raise NotImplementedError("single-slab packing assumes 4*H == 128 and V_out <= 128")

    wx = jnp.dot(emb, params["w_ih"], preferred_element_type=jnp.float32)      # [V_in, 4H]
    scale = params["bn_gamma"] * jax.lax.rsqrt(params["bn_var"] + _BN_EPS)     # [1, H]
    w1f = params["w1"] * scale
    b1f = (params["b1"] - params["bn_mean"]) * scale + params["bn_beta"]
    w1p = jnp.pad(w1f, ((0, 0), (0, LANE - H)))                                # [H, 128]
    b1p = jnp.pad(b1f, ((0, 0), (0, LANE - H)))                                # [1, 128]
    w2p = jnp.pad(params["w2"], ((0, LANE - H), (0, LANE - V_out)))            # [128, 128]
    b2p = jnp.pad(params["b2"], ((0, 0), (0, LANE - V_out)),
                  constant_values=_NEG)                                        # [1, 128]

    sections = [wx, params["w_hh"], params["b_lstm"], w1p, b1p, w2p, b2p]
    offs, parts, rows = [], [], 0
    for s in sections:
        offs.append(rows)
        r8 = _round8(s.shape[0])
        parts.append(jnp.pad(s.astype(jnp.float32),
                             ((0, r8 - s.shape[0]), (0, LANE - s.shape[1]))))
        rows += r8
    slab = jnp.concatenate(parts, axis=0)                                      # [rows, 128]
    return {"slab": slab, "meta": (int(V_in), int(H), int(V_out), tuple(offs))}


# --------------------------------- forward ---------------------------------
@partial(jax.jit, static_argnums=(0,))
def _forward_jit(meta, slab, text, mask):
    V_in, H, V_out, offs = meta
    B, T = text.shape
    # Row t*B + b of ids_col is token (b, t); x_proj is sliced per-t inside the kernel.
    ids_col = text.astype(jnp.int32).T.reshape(T * B, 1)
    maskp = jnp.pad(mask.astype(jnp.float32), ((0, 0), (0, LANE - V_out)),
                    constant_values=1.0)
    out = _fused_call(ids_col, slab, maskp, B=B, T=T, V_in=V_in, H=H, offs=offs)
    return out[:, :V_out]


def seq_to_label_forward(prepared, text, mask=None):
    V_out = prepared["meta"][2]
    B = text.shape[0]
    if mask is None:
        mask = jnp.ones((B, V_out), jnp.float32)
    return _forward_jit(prepared["meta"], prepared["slab"], text, mask)


# ------------------------ pure-JAX reference (original math) ------------------------
def reference_forward(params, text, mask):
    emb = jnp.take(params["embedding"], text, axis=0)
    B, T, _E = emb.shape
    H = params["w_hh"].shape[0]
    h = jnp.zeros((B, H), jnp.float32)
    c = jnp.zeros((B, H), jnp.float32)
    for t in range(T):
        g = emb[:, t, :] @ params["w_ih"] + h @ params["w_hh"] + params["b_lstm"]
        i = jax.nn.sigmoid(g[:, 0 * H:1 * H])
        f = jax.nn.sigmoid(g[:, 1 * H:2 * H])
        gg = jnp.tanh(g[:, 2 * H:3 * H])
        o = jax.nn.sigmoid(g[:, 3 * H:4 * H])
        c = f * c + i * gg
        h = o * jnp.tanh(c)
    z = h @ params["w1"] + params["b1"]
    z = (z - params["bn_mean"]) * jax.lax.rsqrt(params["bn_var"] + _BN_EPS) \
        * params["bn_gamma"] + params["bn_beta"]
    a = jnp.maximum(z, 0.0)
    logits = a @ params["w2"] + params["b2"]
    logits = logits * mask
    return jax.nn.log_softmax(logits, axis=1)


if __name__ == "__main__":
    B, T = 8, 8
    VOCAB_IN, VOCAB_OUT = 32, 16
    E = 32   # embedding_size
    H = 32   # rnn_size

    key = jax.random.PRNGKey(0)
    ks = jax.random.split(key, 10)
    scale = 0.1
    params = {
        "embedding": scale * jax.random.normal(ks[0], (VOCAB_IN, E), jnp.float32),
        # Pre-transposed so the math is x @ W_ih, h @ W_hh (PyTorch stores [4H,E]/[4H,H]).
        "w_ih": scale * jax.random.normal(ks[1], (E, 4 * H), jnp.float32),
        "w_hh": scale * jax.random.normal(ks[2], (H, 4 * H), jnp.float32),
        # b_ih + b_hh combined into one bias row.
        "b_lstm": scale * jax.random.normal(ks[3], (1, 4 * H), jnp.float32),
        "w1": scale * jax.random.normal(ks[4], (H, H), jnp.float32),
        "b1": scale * jax.random.normal(ks[5], (1, H), jnp.float32),
        "bn_gamma": jnp.ones((1, H), jnp.float32),
        "bn_beta": jnp.zeros((1, H), jnp.float32),
        "bn_mean": jnp.zeros((1, H), jnp.float32),
        "bn_var": jnp.ones((1, H), jnp.float32),
        "w2": scale * jax.random.normal(ks[6], (H, VOCAB_OUT), jnp.float32),
        "b2": scale * jax.random.normal(ks[7], (1, VOCAB_OUT), jnp.float32),
    }

    text = jax.random.randint(ks[8], (B, T), 0, VOCAB_IN, dtype=jnp.int32)
    mask = jnp.ones((B, VOCAB_OUT), jnp.float32)  # forward(mask=None) == multiply by ones

    prepared = prepare_params(params)             # one-time, cached parameter prep
    scores = seq_to_label_forward(prepared, text, mask)
    scores = jax.block_until_ready(scores)

    ref = reference_forward(params, text, mask)
    assert scores.shape == (B, VOCAB_OUT)
    assert jnp.allclose(scores, ref, atol=1e-4, rtol=1e-4), "mismatch vs pure-JAX reference"

    print("KERNEL_OK")
</pallas_src>

<mosaic_0001>
module attributes {stable_mosaic.version = 11 : i64} {
  func.func @kernel(%arg0: memref<64x1xi32, #tpu.memory_space<vmem>>, %arg1: memref<248x128xf32, #tpu.memory_space<vmem>>, %arg2: memref<8x128xf32, #tpu.memory_space<vmem>>, %arg3: memref<8x128xf32, #tpu.memory_space<vmem>>) attributes {dimension_semantics = [], scalar_prefetch = 0 : i64, scratch_operands = 0 : i64, tpu.core_type = #tpu.core_type<tc>} {
    %c0 = arith.constant 0 : index
    %c0_0 = arith.constant 0 : index
    %0 = vector.load %arg1[%c0, %c0_0] : memref<248x128xf32, #tpu.memory_space<vmem>>, vector<32x128xf32>
    %c32 = arith.constant 32 : index
    %c0_1 = arith.constant 0 : index
    %1 = vector.load %arg1[%c32, %c0_1] : memref<248x128xf32, #tpu.memory_space<vmem>>, vector<32x128xf32>
    %c64 = arith.constant 64 : index
    %c0_2 = arith.constant 0 : index
    %2 = vector.load %arg1[%c64, %c0_2] : memref<248x128xf32, #tpu.memory_space<vmem>>, vector<1x128xf32>
    %c72 = arith.constant 72 : index
    %c0_3 = arith.constant 0 : index
    %3 = vector.load %arg1[%c72, %c0_3] : memref<248x128xf32, #tpu.memory_space<vmem>>, vector<32x128xf32>
    %c104 = arith.constant 104 : index
    %c0_4 = arith.constant 0 : index
    %4 = vector.load %arg1[%c104, %c0_4] : memref<248x128xf32, #tpu.memory_space<vmem>>, vector<1x128xf32>
    %c112 = arith.constant 112 : index
    %c0_5 = arith.constant 0 : index
    %5 = vector.load %arg1[%c112, %c0_5] : memref<248x128xf32, #tpu.memory_space<vmem>>, vector<128x128xf32>
    %c240 = arith.constant 240 : index
    %c0_6 = arith.constant 0 : index
    %6 = vector.load %arg1[%c240, %c0_6] : memref<248x128xf32, #tpu.memory_space<vmem>>, vector<1x128xf32>
    %c0_7 = arith.constant 0 : index
    %c0_8 = arith.constant 0 : index
    %7 = vector.load %arg0[%c0_7, %c0_8] : memref<64x1xi32, #tpu.memory_space<vmem>>, vector<64x1xi32>
    %8 = tpu.iota {dimensions = array<i32: 1>} : vector<64x32xi32>
    %9 = vector.broadcast %7 : vector<64x1xi32> to vector<64x32xi32>
    %10 = arith.cmpi eq, %8, %9 : vector<64x32xi32>
    %11 = arith.extui %10 : vector<64x32xi1> to vector<64x32xi32>
    %12 = arith.sitofp %11 : vector<64x32xi32> to vector<64x32xf32>
    %cst = arith.constant dense<0.000000e+00> : vector<64x128xf32>
    %13 = tpu.matmul %12, %0, %cst {dimension_numbers = #tpu.dot_dimension_numbers<[1], [0], [0], [1], [0, 0, 1, 1], [], []>} : vector<64x32xf32>, vector<32x128xf32>, vector<64x128xf32> -> vector<64x128xf32>
    %14 = vector.broadcast %2 : vector<1x128xf32> to vector<64x128xf32>
    %15 = arith.addf %13, %14 : vector<64x128xf32>
    %cst_9 = arith.constant 0.000000e+00 : f32
    %16 = vector.broadcast %cst_9 : f32 to vector<8x32xf32>
    %cst_10 = arith.constant 0.000000e+00 : f32
    %17 = vector.broadcast %cst_10 : f32 to vector<8x32xf32>
    %18 = vector.extract_strided_slice %15 {offsets = [0, 0], sizes = [8, 128], strides = [1, 1]} : vector<64x128xf32> to vector<8x128xf32>
    %cst_11 = arith.constant dense<0.000000e+00> : vector<8x128xf32>
    %19 = tpu.matmul %16, %1, %cst_11 {dimension_numbers = #tpu.dot_dimension_numbers<[1], [0], [0], [1], [0, 0, 1, 1], [], []>} : vector<8x32xf32>, vector<32x128xf32>, vector<8x128xf32> -> vector<8x128xf32>
    %20 = arith.addf %18, %19 : vector<8x128xf32>
    %21 = arith.negf %20 : vector<8x128xf32>
    %22 = math.exp %21 : vector<8x128xf32>
    %cst_12 = arith.constant 1.000000e+00 : f32
    %23 = vector.broadcast %cst_12 : f32 to vector<8x128xf32>
    %24 = arith.addf %23, %22 : vector<8x128xf32>
    %25 = arith.divf %23, %24 : vector<8x128xf32>
    %26 = math.tanh %20 : vector<8x128xf32>
    %27 = vector.extract_strided_slice %25 {offsets = [0, 0], sizes = [8, 32], strides = [1, 1]} : vector<8x128xf32> to vector<8x32xf32>
    %28 = vector.extract_strided_slice %25 {offsets = [0, 32], sizes = [8, 32], strides = [1, 1]} : vector<8x128xf32> to vector<8x32xf32>
    %29 = vector.extract_strided_slice %26 {offsets = [0, 64], sizes = [8, 32], strides = [1, 1]} : vector<8x128xf32> to vector<8x32xf32>
    %30 = vector.extract_strided_slice %25 {offsets = [0, 96], sizes = [8, 32], strides = [1, 1]} : vector<8x128xf32> to vector<8x32xf32>
    %31 = arith.mulf %28, %17 : vector<8x32xf32>
    %32 = arith.mulf %27, %29 : vector<8x32xf32>
    %33 = arith.addf %31, %32 : vector<8x32xf32>
    %34 = math.tanh %33 : vector<8x32xf32>
    %35 = arith.mulf %30, %34 : vector<8x32xf32>
    %36 = vector.extract_strided_slice %15 {offsets = [8, 0], sizes = [8, 128], strides = [1, 1]} : vector<64x128xf32> to vector<8x128xf32>
    %cst_13 = arith.constant dense<0.000000e+00> : vector<8x128xf32>
    %37 = tpu.matmul %35, %1, %cst_13 {dimension_numbers = #tpu.dot_dimension_numbers<[1], [0], [0], [1], [0, 0, 1, 1], [], []>} : vector<8x32xf32>, vector<32x128xf32>, vector<8x128xf32> -> vector<8x128xf32>
    %38 = arith.addf %36, %37 : vector<8x128xf32>
    %39 = arith.negf %38 : vector<8x128xf32>
    %40 = math.exp %39 : vector<8x128xf32>
    %cst_14 = arith.constant 1.000000e+00 : f32
    %41 = vector.broadcast %cst_14 : f32 to vector<8x128xf32>
    %42 = arith.addf %41, %40 : vector<8x128xf32>
    %43 = arith.divf %41, %42 : vector<8x128xf32>
    %44 = math.tanh %38 : vector<8x128xf32>
    %45 = vector.extract_strided_slice %43 {offsets = [0, 0], sizes = [8, 32], strides = [1, 1]} : vector<8x128xf32> to vector<8x32xf32>
    %46 = vector.extract_strided_slice %43 {offsets = [0, 32], sizes = [8, 32], strides = [1, 1]} : vector<8x128xf32> to vector<8x32xf32>
    %47 = vector.extract_strided_slice %44 {offsets = [0, 64], sizes = [8, 32], strides = [1, 1]} : vector<8x128xf32> to vector<8x32xf32>
    %48 = vector.extract_strided_slice %43 {offsets = [0, 96], sizes = [8, 32], strides = [1, 1]} : vector<8x128xf32> to vector<8x32xf32>
    %49 = arith.mulf %46, %33 : vector<8x32xf32>
    %50 = arith.mulf %45, %47 : vector<8x32xf32>
    %51 = arith.addf %49, %50 : vector<8x32xf32>
    %52 = math.tanh %51 : vector<8x32xf32>
    %53 = arith.mulf %48, %52 : vector<8x32xf32>
    %54 = vector.extract_strided_slice %15 {offsets = [16, 0], sizes = [8, 128], strides = [1, 1]} : vector<64x128xf32> to vector<8x128xf32>
    %cst_15 = arith.constant dense<0.000000e+00> : vector<8x128xf32>
    %55 = tpu.matmul %53, %1, %cst_15 {dimension_numbers = #tpu.dot_dimension_numbers<[1], [0], [0], [1], [0, 0, 1, 1], [], []>} : vector<8x32xf32>, vector<32x128xf32>, vector<8x128xf32> -> vector<8x128xf32>
    %56 = arith.addf %54, %55 : vector<8x128xf32>
    %57 = arith.negf %56 : vector<8x128xf32>
    %58 = math.exp %57 : vector<8x128xf32>
    %cst_16 = arith.constant 1.000000e+00 : f32
    %59 = vector.broadcast %cst_16 : f32 to vector<8x128xf32>
    %60 = arith.addf %59, %58 : vector<8x128xf32>
    %61 = arith.divf %59, %60 : vector<8x128xf32>
    %62 = math.tanh %56 : vector<8x128xf32>
    %63 = vector.extract_strided_slice %61 {offsets = [0, 0], sizes = [8, 32], strides = [1, 1]} : vector<8x128xf32> to vector<8x32xf32>
    %64 = vector.extract_strided_slice %61 {offsets = [0, 32], sizes = [8, 32], strides = [1, 1]} : vector<8x128xf32> to vector<8x32xf32>
    %65 = vector.extract_strided_slice %62 {offsets = [0, 64], sizes = [8, 32], strides = [1, 1]} : vector<8x128xf32> to vector<8x32xf32>
    %66 = vector.extract_strided_slice %61 {offsets = [0, 96], sizes = [8, 32], strides = [1, 1]} : vector<8x128xf32> to vector<8x32xf32>
    %67 = arith.mulf %64, %51 : vector<8x32xf32>
    %68 = arith.mulf %63, %65 : vector<8x32xf32>
    %69 = arith.addf %67, %68 : vector<8x32xf32>
    %70 = math.tanh %69 : vector<8x32xf32>
    %71 = arith.mulf %66, %70 : vector<8x32xf32>
    %72 = vector.extract_strided_slice %15 {offsets = [24, 0], sizes = [8, 128], strides = [1, 1]} : vector<64x128xf32> to vector<8x128xf32>
    %cst_17 = arith.constant dense<0.000000e+00> : vector<8x128xf32>
    %73 = tpu.matmul %71, %1, %cst_17 {dimension_numbers = #tpu.dot_dimension_numbers<[1], [0], [0], [1], [0, 0, 1, 1], [], []>} : vector<8x32xf32>, vector<32x128xf32>, vector<8x128xf32> -> vector<8x128xf32>
    %74 = arith.addf %72, %73 : vector<8x128xf32>
    %75 = arith.negf %74 : vector<8x128xf32>
    %76 = math.exp %75 : vector<8x128xf32>
    %cst_18 = arith.constant 1.000000e+00 : f32
    %77 = vector.broadcast %cst_18 : f32 to vector<8x128xf32>
    %78 = arith.addf %77, %76 : vector<8x128xf32>
    %79 = arith.divf %77, %78 : vector<8x128xf32>
    %80 = math.tanh %74 : vector<8x128xf32>
    %81 = vector.extract_strided_slice %79 {offsets = [0, 0], sizes = [8, 32], strides = [1, 1]} : vector<8x128xf32> to vector<8x32xf32>
    %82 = vector.extract_strided_slice %79 {offsets = [0, 32], sizes = [8, 32], strides = [1, 1]} : vector<8x128xf32> to vector<8x32xf32>
    %83 = vector.extract_strided_slice %80 {offsets = [0, 64], sizes = [8, 32], strides = [1, 1]} : vector<8x128xf32> to vector<8x32xf32>
    %84 = vector.extract_strided_slice %79 {offsets = [0, 96], sizes = [8, 32], strides = [1, 1]} : vector<8x128xf32> to vector<8x32xf32>
    %85 = arith.mulf %82, %69 : vector<8x32xf32>
    %86 = arith.mulf %81, %83 : vector<8x32xf32>
    %87 = arith.addf %85, %86 : vector<8x32xf32>
    %88 = math.tanh %87 : vector<8x32xf32>
    %89 = arith.mulf %84, %88 : vector<8x32xf32>
    %90 = vector.extract_strided_slice %15 {offsets = [32, 0], sizes = [8, 128], strides = [1, 1]} : vector<64x128xf32> to vector<8x128xf32>
    %cst_19 = arith.constant dense<0.000000e+00> : vector<8x128xf32>
    %91 = tpu.matmul %89, %1, %cst_19 {dimension_numbers = #tpu.dot_dimension_numbers<[1], [0], [0], [1], [0, 0, 1, 1], [], []>} : vector<8x32xf32>, vector<32x128xf32>, vector<8x128xf32> -> vector<8x128xf32>
    %92 = arith.addf %90, %91 : vector<8x128xf32>
    %93 = arith.negf %92 : vector<8x128xf32>
    %94 = math.exp %93 : vector<8x128xf32>
    %cst_20 = arith.constant 1.000000e+00 : f32
    %95 = vector.broadcast %cst_20 : f32 to vector<8x128xf32>
    %96 = arith.addf %95, %94 : vector<8x128xf32>
    %97 = arith.divf %95, %96 : vector<8x128xf32>
    %98 = math.tanh %92 : vector<8x128xf32>
    %99 = vector.extract_strided_slice %97 {offsets = [0, 0], sizes = [8, 32], strides = [1, 1]} : vector<8x128xf32> to vector<8x32xf32>
    %100 = vector.extract_strided_slice %97 {offsets = [0, 32], sizes = [8, 32], strides = [1, 1]} : vector<8x128xf32> to vector<8x32xf32>
    %101 = vector.extract_strided_slice %98 {offsets = [0, 64], sizes = [8, 32], strides = [1, 1]} : vector<8x128xf32> to vector<8x32xf32>
    %102 = vector.extract_strided_slice %97 {offsets = [0, 96], sizes = [8, 32], strides = [1, 1]} : vector<8x128xf32> to vector<8x32xf32>
    %103 = arith.mulf %100, %87 : vector<8x32xf32>
    %104 = arith.mulf %99, %101 : vector<8x32xf32>
    %105 = arith.addf %103, %104 : vector<8x32xf32>
    %106 = math.tanh %105 : vector<8x32xf32>
    %107 = arith.mulf %102, %106 : vector<8x32xf32>
    %108 = vector.extract_strided_slice %15 {offsets = [40, 0], sizes = [8, 128], strides = [1, 1]} : vector<64x128xf32> to vector<8x128xf32>
    %cst_21 = arith.constant dense<0.000000e+00> : vector<8x128xf32>
    %109 = tpu.matmul %107, %1, %cst_21 {dimension_numbers = #tpu.dot_dimension_numbers<[1], [0], [0], [1], [0, 0, 1, 1], [], []>} : vector<8x32xf32>, vector<32x128xf32>, vector<8x128xf32> -> vector<8x128xf32>
    %110 = arith.addf %108, %109 : vector<8x128xf32>
    %111 = arith.negf %110 : vector<8x128xf32>
    %112 = math.exp %111 : vector<8x128xf32>
    %cst_22 = arith.constant 1.000000e+00 : f32
    %113 = vector.broadcast %cst_22 : f32 to vector<8x128xf32>
    %114 = arith.addf %113, %112 : vector<8x128xf32>
    %115 = arith.divf %113, %114 : vector<8x128xf32>
    %116 = math.tanh %110 : vector<8x128xf32>
    %117 = vector.extract_strided_slice %115 {offsets = [0, 0], sizes = [8, 32], strides = [1, 1]} : vector<8x128xf32> to vector<8x32xf32>
    %118 = vector.extract_strided_slice %115 {offsets = [0, 32], sizes = [8, 32], strides = [1, 1]} : vector<8x128xf32> to vector<8x32xf32>
    %119 = vector.extract_strided_slice %116 {offsets = [0, 64], sizes = [8, 32], strides = [1, 1]} : vector<8x128xf32> to vector<8x32xf32>
    %120 = vector.extract_strided_slice %115 {offsets = [0, 96], sizes = [8, 32], strides = [1, 1]} : vector<8x128xf32> to vector<8x32xf32>
    %121 = arith.mulf %118, %105 : vector<8x32xf32>
    %122 = arith.mulf %117, %119 : vector<8x32xf32>
    %123 = arith.addf %121, %122 : vector<8x32xf32>
    %124 = math.tanh %123 : vector<8x32xf32>
    %125 = arith.mulf %120, %124 : vector<8x32xf32>
    %126 = vector.extract_strided_slice %15 {offsets = [48, 0], sizes = [8, 128], strides = [1, 1]} : vector<64x128xf32> to vector<8x128xf32>
    %cst_23 = arith.constant dense<0.000000e+00> : vector<8x128xf32>
    %127 = tpu.matmul %125, %1, %cst_23 {dimension_numbers = #tpu.dot_dimension_numbers<[1], [0], [0], [1], [0, 0, 1, 1], [], []>} : vector<8x32xf32>, vector<32x128xf32>, vector<8x128xf32> -> vector<8x128xf32>
    %128 = arith.addf %126, %127 : vector<8x128xf32>
    %129 = arith.negf %128 : vector<8x128xf32>
    %130 = math.exp %129 : vector<8x128xf32>
    %cst_24 = arith.constant 1.000000e+00 : f32
    %131 = vector.broadcast %cst_24 : f32 to vector<8x128xf32>
    %132 = arith.addf %131, %130 : vector<8x128xf32>
    %133 = arith.divf %131, %132 : vector<8x128xf32>
    %134 = math.tanh %128 : vector<8x128xf32>
    %135 = vector.extract_strided_slice %133 {offsets = [0, 0], sizes = [8, 32], strides = [1, 1]} : vector<8x128xf32> to vector<8x32xf32>
    %136 = vector.extract_strided_slice %133 {offsets = [0, 32], sizes = [8, 32], strides = [1, 1]} : vector<8x128xf32> to vector<8x32xf32>
    %137 = vector.extract_strided_slice %134 {offsets = [0, 64], sizes = [8, 32], strides = [1, 1]} : vector<8x128xf32> to vector<8x32xf32>
    %138 = vector.extract_strided_slice %133 {offsets = [0, 96], sizes = [8, 32], strides = [1, 1]} : vector<8x128xf32> to vector<8x32xf32>
    %139 = arith.mulf %136, %123 : vector<8x32xf32>
    %140 = arith.mulf %135, %137 : vector<8x32xf32>
    %141 = arith.addf %139, %140 : vector<8x32xf32>
    %142 = math.tanh %141 : vector<8x32xf32>
    %143 = arith.mulf %138, %142 : vector<8x32xf32>
    %144 = vector.extract_strided_slice %15 {offsets = [56, 0], sizes = [8, 128], strides = [1, 1]} : vector<64x128xf32> to vector<8x128xf32>
    %cst_25 = arith.constant dense<0.000000e+00> : vector<8x128xf32>
    %145 = tpu.matmul %143, %1, %cst_25 {dimension_numbers = #tpu.dot_dimension_numbers<[1], [0], [0], [1], [0, 0, 1, 1], [], []>} : vector<8x32xf32>, vector<32x128xf32>, vector<8x128xf32> -> vector<8x128xf32>
    %146 = arith.addf %144, %145 : vector<8x128xf32>
    %147 = arith.negf %146 : vector<8x128xf32>
    %148 = math.exp %147 : vector<8x128xf32>
    %cst_26 = arith.constant 1.000000e+00 : f32
    %149 = vector.broadcast %cst_26 : f32 to vector<8x128xf32>
    %150 = arith.addf %149, %148 : vector<8x128xf32>
    %151 = arith.divf %149, %150 : vector<8x128xf32>
    %152 = math.tanh %146 : vector<8x128xf32>
    %153 = vector.extract_strided_slice %151 {offsets = [0, 0], sizes = [8, 32], strides = [1, 1]} : vector<8x128xf32> to vector<8x32xf32>
    %154 = vector.extract_strided_slice %151 {offsets = [0, 32], sizes = [8, 32], strides = [1, 1]} : vector<8x128xf32> to vector<8x32xf32>
    %155 = vector.extract_strided_slice %152 {offsets = [0, 64], sizes = [8, 32], strides = [1, 1]} : vector<8x128xf32> to vector<8x32xf32>
    %156 = vector.extract_strided_slice %151 {offsets = [0, 96], sizes = [8, 32], strides = [1, 1]} : vector<8x128xf32> to vector<8x32xf32>
    %157 = arith.mulf %154, %141 : vector<8x32xf32>
    %158 = arith.mulf %153, %155 : vector<8x32xf32>
    %159 = arith.addf %157, %158 : vector<8x32xf32>
    %160 = math.tanh %159 : vector<8x32xf32>
    %161 = arith.mulf %156, %160 : vector<8x32xf32>
    %cst_27 = arith.constant dense<0.000000e+00> : vector<8x128xf32>
    %162 = tpu.matmul %161, %3, %cst_27 {dimension_numbers = #tpu.dot_dimension_numbers<[1], [0], [0], [1], [0, 0, 1, 1], [], []>} : vector<8x32xf32>, vector<32x128xf32>, vector<8x128xf32> -> vector<8x128xf32>
    %163 = vector.broadcast %4 : vector<1x128xf32> to vector<8x128xf32>
    %164 = arith.addf %162, %163 : vector<8x128xf32>
    %cst_28 = arith.constant 0.000000e+00 : f32
    %165 = vector.broadcast %cst_28 : f32 to vector<8x128xf32>
    %166 = arith.maximumf %164, %165 : vector<8x128xf32>
    %cst_29 = arith.constant dense<0.000000e+00> : vector<8x128xf32>
    %167 = tpu.matmul %166, %5, %cst_29 {dimension_numbers = #tpu.dot_dimension_numbers<[1], [0], [0], [1], [0, 0, 1, 1], [], []>} : vector<8x128xf32>, vector<128x128xf32>, vector<8x128xf32> -> vector<8x128xf32>
    %168 = vector.broadcast %6 : vector<1x128xf32> to vector<8x128xf32>
    %169 = arith.addf %167, %168 : vector<8x128xf32>
    %c0_30 = arith.constant 0 : index
    %c0_31 = arith.constant 0 : index
    %170 = vector.load %arg2[%c0_30, %c0_31] : memref<8x128xf32, #tpu.memory_space<vmem>>, vector<8x128xf32>
    %171 = arith.mulf %169, %170 : vector<8x128xf32>
    %cst_32 = arith.constant dense<0xFF800000> : vector<8xf32>
    %172 = vector.multi_reduction <maximumf>, %171, %cst_32 [1] : vector<8x128xf32> to vector<8xf32>
    %173 = vector.shape_cast %172 : vector<8xf32> to vector<8x1xf32>
    %174 = vector.broadcast %173 : vector<8x1xf32> to vector<8x128xf32>
    %175 = arith.subf %171, %174 : vector<8x128xf32>
    %176 = math.exp %175 : vector<8x128xf32>
    %cst_33 = arith.constant dense<0.000000e+00> : vector<8xf32>
    %177 = vector.multi_reduction <add>, %176, %cst_33 [1] : vector<8x128xf32> to vector<8xf32>
    %178 = vector.shape_cast %177 : vector<8xf32> to vector<8x1xf32>
    %179 = math.log %178 : vector<8x1xf32>
    %180 = arith.addf %179, %173 : vector<8x1xf32>
    %181 = vector.broadcast %180 : vector<8x1xf32> to vector<8x128xf32>
    %182 = arith.subf %171, %181 : vector<8x128xf32>
    %c0_34 = arith.constant 0 : index
    %c0_35 = arith.constant 0 : index
    %183 = vector.load %arg3[%c0_34, %c0_35] : memref<8x128xf32, #tpu.memory_space<vmem>>, vector<8x128xf32>
    tpu.vector_store %arg3[%c0_34, %c0_35], %182 {strides = array<i32>} : memref<8x128xf32, #tpu.memory_space<vmem>>, vector<8x128xf32>,
    return
  }
}

</mosaic_0001>

<bundles_post_ra>
// kernel: _forward_jit.1
= control target key start
LH: loop header
LB: loop body
LE: loop exit
PB: predicated region body
PF: predicated region fallthrough
CT: control target
= control target key end

     0   :  { %8 = vsyncpa [#allocation3], 0  ;;  %s1932_s0 = inlined_call_operand.vmem [shape: s32[64,1], index: 0, kind: input, shape index: {}]   ;;  %s1933_s1 = inlined_call_operand.hbm [shape: f32[248,128], index: 1, kind: input, shape index: {}]   ;;  %s1934_s2 = inlined_call_operand.vmem [shape: f32[8,128], index: 2, kind: input, shape index: {}]   ;;  %s1935_s3 = inlined_call_operand.hbm [shape: f32[8,128], index: 3, kind: output, shape index: {}]  }
   0x1   :  { %9 = vsyncpa [#allocation4], 0  ;;  %s1710_s12 = smov [#allocation2]   ;;  %s1662_s16 = scalar_lea.hbm %s1933_s1, 3968 }
   0x2   :  { %s17_s13 = sshll.u32 %s1710_s12, 4  ;;  %p1663_p0 = scmp.ne.s32.totalorder %s1933_s1, %s1662_s16  ;;  %s18_s13 = int_to_ptr.vmem [resolvable:$true] %s17_s13 }
   0x3   :  { %p1666_p1 = scmp.lt.u32.totalorder %s1662_s16, %s1933_s1 }
   0x5   :  { %p1668_p2 = pnand %p1666_p1, %p1663_p0 }
   0x7   :  { %1671 = shalt.err (!%p1668_p2)
}
   0x8   :  { %s1672_s21 = scalar_lea.vmem %s18_s13, 3968  ;;  %p1677_p4 = scmp.lt.s32.totalorder %s18_s13, %s18_s13 }
   0x9   :  { %p1673_p3 = scmp.ne.s32.totalorder %s18_s13, %s1672_s21  ;;  %p1678_p5 = scmp.lt.s32.totalorder %s1672_s21, %s1672_s21 }
   0xb   :  { %p1679_p6 = por %p1678_p5, %p1677_p4 }
   0xd   :  { %p1680_p7 = pnand %p1679_p6, %p1673_p3 }
   0xf   :  { %1683 = shalt.err (!%p1680_p7)
}
  0x10   :  { %s1711_s22 = smov 128   ;;  %s1712_s23 = smov 8  }
  0x11   :  { %23 = dma.hbm_to_vmem [thread:$0]  %s1933_s1, 3968, %s18_s13, [#allocation3], %s1711_s22, %s1711_s22, %s1712_s23  }
  0x12   :  { %1706 = dma.done.wait [#allocation3], 3968  }
  0x13   :  { %1707 = vsyncadd [#allocation3], 4294963328  ;;  %v1713_v0 = vmov 0   ;;  %v62_v1 = vld [vmem:[%s1932_s0 + $0x10] sm:$0xff]  ;;  %v60_v2 = vld [vmem:[%s1932_s0] sm:$0xff]  ;;  %v1714_v15 = vmov 0.0|0.0   ;;  %v68_v23 = vlaneseq }
  0x14   :  { %1593 = vset.pattern.permute.xlu1 %v1713_v0  ;;  %1592 = vset.pattern.permute.xlu0 %v1713_v0  ;;  %v63_v3 = vld [vmem:[%s1932_s0 + $0x18] sm:$0xff]  ;;  %v61_v4 = vld [vmem:[%s1932_s0 + $0x8] sm:$0xff]  ;;  %v29_v5 = vld [vmem:[#allocation2] sm:$0xff]  ;;  %vm1715_vm0 = vmmov 0   ;;  %v1716_v22 = vmov 0.0   ;;  %vm122_vm1 = vcmask 261120  }
  0x15   :  { %77 = vperm.xlu1 %1593, %v62_v1   ;;  %71 = vperm.xlu0 %1592, %v60_v2   ;;  %v30_v6 = vld [vmem:[#allocation2 + $0x8] sm:$0xff]  ;;  %v31_v7 = vld [vmem:[#allocation2 + $0x10] sm:$0xff]  ;;  %v32_v8 = vld [vmem:[#allocation2 + $0x18] sm:$0xff]  ;;  %v69_v24 = vand.u32 127, %v68_v23  ;;  %s1718_s14 = smov 32   ;;  %s1719_s17 = smov [#allocation5]  }
  0x16   :  { %v1496_v9 = vpack.c.bf16 %v30_v6, %v29_v5  ;;  %v1500_v10 = vpack.c.bf16 %v32_v8, %v31_v7  ;;  %v65_v11 = vld [vmem:[%s1932_s0 + $0x28] sm:$0xff]  ;;  %v64_v12 = vld [vmem:[%s1932_s0 + $0x20] sm:$0xff]  ;;  %1510 = vmatprep.subr.bf16.mxu1 %v1714_v15  ;;  %v67_v17 = vld [vmem:[%s1932_s0 + $0x38] sm:$0xff]  ;;  %1381 = vmatprep.mubr.msk.f32.mxu1 %vm1715_vm0, %v1716_v22  ;;  %s1224_s18 = sshll.u32 %s1719_s17, 4  ;;  %s1225_s18 = int_to_ptr.vmem [resolvable:$true] %s1224_s18 }
  0x17   :  { %v33_v13 = vld [vmem:[#allocation2 + $0x20] sm:$0xff]  ;;  %v34_v14 = vld [vmem:[#allocation2 + $0x28] sm:$0xff]  ;;  %v66_v18 = vld [vmem:[%s1932_s0 + $0x30] sm:$0xff]  ;;  %s1717_s0 = smov 64   ;;  %p1689_p9 = scmp.lt.s32.totalorder %s1225_s18, %s1225_s18 }
  0x18   :  { %1497 = vmatprep.subr.bf16.mxu0 %v1496_v9  ;;  %v1771_v16 = vpack.c.bf16 %v34_v14, %v33_v13  ;;  %v35_v19 = vld [vmem:[#allocation2 + $0x30] sm:$0xff]  ;;  %v36_v20 = vld [vmem:[#allocation2 + $0x38] sm:$0xff]  ;;  %v1241_v41 = vld [vmem:[#allocation2 + $0x40] ss:$0 sm:$0xff] }
  0x19   :  { %80 = vperm.xlu1 %1593, %v63_v3   ;;  %74 = vperm.xlu0 %1592, %v61_v4   ;;  %v1782_v21 = vpack.c.bf16 %v36_v20, %v35_v19 }
  0x1a   :  { %1499 = vmatpush3.bf16.msra.mxu0 %v1496_v9  ;;  %1512 = vmatpush3.bf16.msra.mxu1 %v1771_v16 }
  0x1b   :  { %1501 = vmatprep.subr.bf16.mxu0 %v1500_v10  ;;  %1513 = vmatprep.subr.bf16.mxu1 %v1714_v15 }
  0x1d   :  { %86 = vperm.xlu1 %1593, %v65_v11   ;;  %83 = vperm.xlu0 %1592, %v64_v12  }
  0x1e   :  { %1503 = vmatpush3.bf16.msra.mxu0 %v1500_v10  ;;  %1515 = vmatpush3.bf16.msra.mxu1 %v1782_v21 }
  0x1f   :  { %1504 = vmatprep.subr.bf16.mxu0 %v1714_v15  ;;  %1522 = vmatprep.subr.bf16.mxu1 %v1714_v15 }
  0x21   :  { %92 = vperm.xlu1 %1593, %v67_v17   ;;  %89 = vperm.xlu0 %1592, %v66_v18  }
  0x94   :  { %v78_v25 = vpop.permute.xlu1 %77  ;;  %v72_v26 = vpop.permute.xlu0 %71 }
  0x95   :  { %vm94_vm2 = vcmp.eq.s32.totalorder %v69_v24, %v72_v26  ;;  %vm96_vm3 = vcmp.eq.s32.totalorder %v69_v24, %v78_v25 }
  0x96   :  { %v1233_v27 = vsel %vm94_vm2, 1.0, %v1716_v22  ;;  %v1235_v30 = vsel %vm96_vm3, 1.0, %v1716_v22 }
  0x97   :  { %1350 = vmatprep.mubr.msk.f32.mxu0 %vm122_vm1, %v1233_v27 }
  0x98   :  { %v81_v28 = vpop.permute.xlu1 %80  ;;  %v75_v29 = vpop.permute.xlu0 %74 }
  0x99   :  { %vm95_vm4 = vcmp.eq.s32.totalorder %v69_v24, %v75_v29  ;;  %vm97_vm5 = vcmp.eq.s32.totalorder %v69_v24, %v81_v28 }
  0x9a   :  { %v1234_v31 = vsel %vm95_vm4, 1.0, %v1716_v22  ;;  %v1236_v34 = vsel %vm97_vm5, 1.0, %v1716_v22 }
  0x9b   :  { %1351 = vmatmul.mubr.msk.f32.vlgmr.msra.gmra.mrb[0].mxu0 %vm122_vm1, %v1234_v31 }
  0x9c   :  { %1506 = vmatpush3.bf16.msra.mxu0 %v1771_v16  ;;  %v87_v32 = vpop.permute.xlu1 %86  ;;  %v84_v33 = vpop.permute.xlu0 %83  ;;  %1353 = vmatprep.mubr.msk.f32.mxu0 %vm122_vm1, %v1235_v30 }
  0x9d   :  { %vm98_vm6 = vcmp.eq.s32.totalorder %v69_v24, %v84_v33  ;;  %1507 = vmatprep.subr.bf16.mxu0 %v1714_v15  ;;  %vm99_vm7 = vcmp.eq.s32.totalorder %v69_v24, %v87_v32 }
  0x9e   :  { %v1237_v35 = vsel %vm98_vm6, 1.0, %v1716_v22  ;;  %v1238_v38 = vsel %vm99_vm7, 1.0, %v1716_v22 }
  0x9f   :  { %1354 = vmatmul.mubr.msk.f32.gmra.mrb[2].mxu0 %vm122_vm1, %v1236_v34 }
  0xa0   :  { %v93_v36 = vpop.permute.xlu1 %92  ;;  %v90_v37 = vpop.permute.xlu0 %89  ;;  %1356 = vmatprep.mubr.msk.f32.mxu0 %vm122_vm1, %v1237_v35  ;;  %1509 = vmatpush3.bf16.msra.mxu0 %v1782_v21 }
  0xa1   :  { %vm100_vm8 = vcmp.eq.s32.totalorder %v69_v24, %v90_v37  ;;  %1516 = vmatprep.subr.bf16.mxu0 %v1714_v15  ;;  %vm101_vm9 = vcmp.eq.s32.totalorder %v69_v24, %v93_v36 }
  0xa2   :  { %v1239_v39 = vsel %vm100_vm8, 1.0, %v1716_v22  ;;  %v1240_v40 = vsel %vm101_vm9, 1.0, %v1716_v22 }
  0xa3   :  { %1357 = vmatmul.mubr.msk.f32.gmra.mrb[4].mxu0 %vm122_vm1, %v1238_v38 }
  0xa4   :  { %1359 = vmatprep.mubr.msk.f32.mxu0 %vm122_vm1, %v1239_v39 }
  0xa7   :  { %1360 = vmatmul.mubr.msk.f32.gmra.mrb[6].mxu0 %vm122_vm1, %v1240_v40 }
  0xa8   :  { %1370 = vmatprep.mubr.msk.f32.mxu0 %vm1715_vm0, %v1716_v22 }
  0xab   :  { %1371 = vmatmul.mubr.f32.vlgmr.msra.gmra.mrb[8].mxu0 %v1716_v22 }
  0xac   :  { %1518 = vmatpush3.bf16.msra.mxu0 %v1771_v16  ;;  %1392 = vmatprep.mubr.msk.f32.mxu0 %vm1715_vm0, %v1716_v22 }
  0xad   :  { %1519 = vmatprep.subr.bf16.mxu0 %v1714_v15 }
  0xb0   :  { %1521 = vmatpush3.bf16.msra.mxu0 %v1782_v21 }
  0xb1   :  { %1528 = vmatprep.subr.bf16.mxu0 %v1714_v15 }
 0x16e   :  { %v1352_v42 = vpop.f32.mrb[0].mxu0 }
 0x16f   :  { %v219_v43 = vadd.f32 %v1352_v42, %v1241_v41  ;;  %v213_v44 = vpop.f32.mrb[1].mxu0 }
 0x170   :  { %v214_v57 = vadd.f32 %v1241_v41, %v213_v44 }
 0x172   :  { %v1355_v45 = vpop.f32.mrb[2].mxu0 }
 0x173   :  { %v1817_v46 = vadd.f32 %v1355_v45, %v1241_v41  ;;  %v223_v47 = vpop.f32.mrb[3].mxu0 }
 0x174   :  { %v1819_v48 = vadd.f32 %v1241_v41, %v223_v47 }
 0x176   :  { %v1358_v49 = vpop.f32.mrb[4].mxu0 }
 0x177   :  { %v1821_v50 = vadd.f32 %v1358_v49, %v1241_v41  ;;  %v233_v51 = vpop.f32.mrb[5].mxu0 }
 0x178   :  { %v1823_v52 = vadd.f32 %v1241_v41, %v233_v51 }
 0x17a   :  { %v1361_v53 = vpop.f32.mrb[6].mxu0 }
 0x17b   :  { %v1825_v54 = vadd.f32 %v1361_v53, %v1241_v41  ;;  %v243_v55 = vpop.f32.mrb[7].mxu0 }
 0x17c   :  { %v1827_v56 = vadd.f32 %v1241_v41, %v243_v55 }
 0x17e   :  { %v321_v58 = vpop.f32.mrb[8].mxu0 }
 0x17f   :  { %v325_v59 = vadd.f32 %v321_v58, %v214_v57  ;;  %v1372_v60 = vpop.f32.mrb[9].mxu0 }
 0x181   :  { %1594 = vtanh.f32 %v325_v59  ;;  %v1250_v62 = vmul.f32 -1.442695, %v325_v59 }
 0x183   :  { %1596 = vpow2.f32 %v1250_v62 }
 0x18b   :  { %v1595_v61 = vpop.eup %1594 }
 0x18c   :  { %335 = vrot.lane.b32.xlu0 %v1595_v61, %s1717_s0 }
 0x18d   :  { %v1597_v63 = vpop.eup %1596 }
 0x18e   :  { %v329_v0 = vadd.f32 1.0, %v1597_v63 }
 0x190   :  { %1598 = vrcp.f32 %v329_v0 }
 0x19a   :  { %v1599_v1 = vpop.eup %1598 }
 0x19b   :  { %v333_v4 = vmul.f32 0.0, %v1599_v1 }
 0x1fe   :  { %v336_v2 = vpop.permute.xlu0 %335 }
 0x1ff   :  { %v338_v3 = vmul.f32 %v1599_v1, %v336_v2 }
 0x201   :  { %340 = vrot.lane.b32.xlu1 %v338_v3, %s1718_s14 }
 0x273   :  { %v341_v5 = vpop.permute.xlu1 %340 }
 0x274   :  { %v343_v6 = vadd.f32 %v341_v5, %v333_v4 }
 0x276   :  { %1600 = vtanh.f32 %v343_v6 }
 0x280   :  { %v1601_v7 = vpop.eup %1600 }
 0x281   :  { %346 = vrot.lane.b32.xlu0 %v1601_v7, %s1717_s0 }
 0x2f3   :  { %v347_v8 = vpop.permute.xlu0 %346 }
 0x2f4   :  { %v349_v9 = vmul.f32 %v1599_v1, %v347_v8 }
 0x2f6   :  { %351 = vrot.lane.b32.xlu1 %v349_v9, %s1718_s14 }
 0x368   :  { %v352_v10 = vpop.permute.xlu1 %351 }
 0x369   :  { %1382 = vmatmul.mubr.msk.f32.vlgmr.msra.gmra.mrb[0].mxu1 %vm122_vm1, %v352_v10 }
 0x36a   :  { %1524 = vmatpush3.bf16.msra.mxu1 %v1771_v16  ;;  %1403 = vmatprep.mubr.msk.f32.mxu1 %vm1715_vm0, %v1716_v22 }
 0x36b   :  { %1525 = vmatprep.subr.bf16.mxu1 %v1714_v15 }
 0x36e   :  { %1527 = vmatpush3.bf16.msra.mxu1 %v1782_v21 }
 0x36f   :  { %1534 = vmatprep.subr.bf16.mxu1 %v1714_v15 }
 0x43c   :  { %v421_v11 = vpop.f32.mrb[0].mxu1 }
 0x43d   :  { %v425_v12 = vadd.f32 %v421_v11, %v219_v43  ;;  %v1383_v13 = vpop.f32.mrb[1].mxu1 }
 0x43f   :  { %1602 = vtanh.f32 %v425_v12  ;;  %v1252_v17 = vmul.f32 -1.442695, %v425_v12 }
 0x441   :  { %1604 = vpow2.f32 %v1252_v17 }
 0x449   :  { %v1603_v14 = vpop.eup %1602 }
 0x44a   :  { %435 = vrot.lane.b32.xlu0 %v1603_v14, %s1717_s0 }
 0x44b   :  { %v1605_v18 = vpop.eup %1604 }
 0x44c   :  { %v429_v19 = vadd.f32 1.0, %v1605_v18 }
 0x44e   :  { %1606 = vrcp.f32 %v429_v19 }
 0x458   :  { %v1607_v20 = vpop.eup %1606 }
 0x459   :  { %v433_v25 = vmul.f32 %v1607_v20, %v343_v6 }
 0x4bc   :  { %v436_v23 = vpop.permute.xlu0 %435 }
 0x4bd   :  { %v438_v24 = vmul.f32 %v1607_v20, %v436_v23 }
 0x4bf   :  { %440 = vrot.lane.b32.xlu1 %v438_v24, %s1718_s14 }
 0x531   :  { %v441_v26 = vpop.permute.xlu1 %440 }
 0x532   :  { %v443_v27 = vadd.f32 %v441_v26, %v433_v25 }
 0x534   :  { %1608 = vtanh.f32 %v443_v27 }
 0x53e   :  { %v1609_v28 = vpop.eup %1608 }
 0x53f   :  { %446 = vrot.lane.b32.xlu0 %v1609_v28, %s1717_s0 }
 0x5b1   :  { %v447_v29 = vpop.permute.xlu0 %446 }
 0x5b2   :  { %v449_v30 = vmul.f32 %v1607_v20, %v447_v29 }
 0x5b4   :  { %451 = vrot.lane.b32.xlu1 %v449_v30, %s1718_s14 }
 0x626   :  { %v452_v31 = vpop.permute.xlu1 %451 }
 0x627   :  { %1393 = vmatmul.mubr.msk.f32.vlgmr.msra.gmra.mrb[10].mxu0 %vm122_vm1, %v452_v31 }
 0x628   :  { %1530 = vmatpush3.bf16.msra.mxu0 %v1771_v16  ;;  %1414 = vmatprep.mubr.msk.f32.mxu0 %vm1715_vm0, %v1716_v22 }
 0x629   :  { %1531 = vmatprep.subr.bf16.mxu0 %v1714_v15 }
 0x62c   :  { %1533 = vmatpush3.bf16.msra.mxu0 %v1782_v21 }
 0x62d   :  { %1540 = vmatprep.subr.bf16.mxu0 %v1714_v15 }
 0x6fa   :  { %v521_v32 = vpop.f32.mrb[10].mxu0 }
 0x6fb   :  { %v525_v33 = vadd.f32 %v521_v32, %v1819_v48  ;;  %v1394_v34 = vpop.f32.mrb[11].mxu0 }
 0x6fd   :  { %1610 = vtanh.f32 %v525_v33  ;;  %v1254_v36 = vmul.f32 -1.442695, %v525_v33 }
 0x6ff   :  { %1612 = vpow2.f32 %v1254_v36 }
 0x707   :  { %v1611_v35 = vpop.eup %1610 }
 0x708   :  { %535 = vrot.lane.b32.xlu0 %v1611_v35, %s1717_s0 }
 0x709   :  { %v1613_v37 = vpop.eup %1612 }
 0x70a   :  { %v529_v38 = vadd.f32 1.0, %v1613_v37 }
 0x70c   :  { %1614 = vrcp.f32 %v529_v38 }
 0x716   :  { %v1615_v39 = vpop.eup %1614 }
 0x717   :  { %v533_v42 = vmul.f32 %v1615_v39, %v443_v27 }
 0x77a   :  { %v536_v40 = vpop.permute.xlu0 %535 }
 0x77b   :  { %v538_v41 = vmul.f32 %v1615_v39, %v536_v40 }
 0x77d   :  { %540 = vrot.lane.b32.xlu1 %v538_v41, %s1718_s14 }
 0x7ef   :  { %v541_v43 = vpop.permute.xlu1 %540 }
 0x7f0   :  { %v543_v44 = vadd.f32 %v541_v43, %v533_v42 }
 0x7f2   :  { %1616 = vtanh.f32 %v543_v44 }
 0x7fc   :  { %v1617_v45 = vpop.eup %1616 }
 0x7fd   :  { %546 = vrot.lane.b32.xlu0 %v1617_v45, %s1717_s0 }
 0x86f   :  { %v547_v47 = vpop.permute.xlu0 %546 }
 0x870   :  { %v549_v48 = vmul.f32 %v1615_v39, %v547_v47 }
 0x872   :  { %551 = vrot.lane.b32.xlu1 %v549_v48, %s1718_s14 }
 0x8e4   :  { %v552_v49 = vpop.permute.xlu1 %551 }
 0x8e5   :  { %1404 = vmatmul.mubr.msk.f32.vlgmr.msra.gmra.mrb[2].mxu1 %vm122_vm1, %v552_v49 }
 0x8e6   :  { %1536 = vmatpush3.bf16.msra.mxu1 %v1771_v16  ;;  %1425 = vmatprep.mubr.msk.f32.mxu1 %vm1715_vm0, %v1716_v22 }
 0x8e7   :  { %1537 = vmatprep.subr.bf16.mxu1 %v1714_v15 }
 0x8ea   :  { %1539 = vmatpush3.bf16.msra.mxu1 %v1782_v21 }
 0x8eb   :  { %1546 = vmatprep.subr.bf16.mxu1 %v1714_v15 }
 0x9b8   :  { %v621_v51 = vpop.f32.mrb[2].mxu1 }
 0x9b9   :  { %v625_v53 = vadd.f32 %v621_v51, %v1817_v46  ;;  %v1405_v55 = vpop.f32.mrb[3].mxu1 }
 0x9bb   :  { %1618 = vtanh.f32 %v625_v53  ;;  %v1256_v58 = vmul.f32 -1.442695, %v625_v53 }
 0x9bd   :  { %1620 = vpow2.f32 %v1256_v58 }
 0x9c5   :  { %v1619_v57 = vpop.eup %1618 }
 0x9c6   :  { %635 = vrot.lane.b32.xlu0 %v1619_v57, %s1717_s0 }
 0x9c7   :  { %v1621_v59 = vpop.eup %1620 }
 0x9c8   :  { %v629_v60 = vadd.f32 1.0, %v1621_v59 }
 0x9ca   :  { %1622 = vrcp.f32 %v629_v60 }
 0x9d4   :  { %v1623_v61 = vpop.eup %1622 }
 0x9d5   :  { %v633_v0 = vmul.f32 %v1623_v61, %v543_v44 }
 0xa38   :  { %v636_v62 = vpop.permute.xlu0 %635 }
 0xa39   :  { %v638_v63 = vmul.f32 %v1623_v61, %v636_v62 }
 0xa3b   :  { %640 = vrot.lane.b32.xlu1 %v638_v63, %s1718_s14 }
 0xaad   :  { %v641_v1 = vpop.permute.xlu1 %640 }
 0xaae   :  { %v643_v2 = vadd.f32 %v641_v1, %v633_v0 }
 0xab0   :  { %1624 = vtanh.f32 %v643_v2 }
 0xaba   :  { %v1625_v46 = vpop.eup %1624 }
 0xabb   :  { %646 = vrot.lane.b32.xlu0 %v1625_v46, %s1717_s0 }
 0xb2d   :  { %v647_v3 = vpop.permute.xlu0 %646 }
 0xb2e   :  { %v649_v4 = vmul.f32 %v1623_v61, %v647_v3 }
 0xb30   :  { %651 = vrot.lane.b32.xlu1 %v649_v4, %s1718_s14 }
 0xba2   :  { %v652_v5 = vpop.permute.xlu1 %651 }
 0xba3   :  { %1415 = vmatmul.mubr.msk.f32.vlgmr.msra.gmra.mrb[12].mxu0 %vm122_vm1, %v652_v5 }
 0xba4   :  { %1542 = vmatpush3.bf16.msra.mxu0 %v1771_v16  ;;  %1436 = vmatprep.mubr.msk.f32.mxu0 %vm1715_vm0, %v1716_v22 }
 0xba5   :  { %1543 = vmatprep.subr.bf16.mxu0 %v1714_v15 }
 0xba8   :  { %1545 = vmatpush3.bf16.msra.mxu0 %v1782_v21 }
 0xba9   :  { %1552 = vmatprep.subr.bf16.mxu0 %v1714_v15 }
 0xc76   :  { %v721_v6 = vpop.f32.mrb[12].mxu0 }
 0xc77   :  { %v725_v7 = vadd.f32 %v721_v6, %v1823_v52  ;;  %v1416_v8 = vpop.f32.mrb[13].mxu0 }
 0xc78   :  { %v39_v8 = vld [vmem:[#allocation2 + $0x50] sm:$0xff] }
 0xc79   :  { %1626 = vtanh.f32 %v725_v7  ;;  %v1258_v10 = vmul.f32 -1.442695, %v725_v7 }
 0xc7b   :  { %1628 = vpow2.f32 %v1258_v10 }
 0xc83   :  { %v1627_v9 = vpop.eup %1626 }
 0xc84   :  { %735 = vrot.lane.b32.xlu0 %v1627_v9, %s1717_s0  ;;  %v40_v9 = vld [vmem:[#allocation2 + $0x58] sm:$0xff] }
 0xc85   :  { %v1629_v11 = vpop.eup %1628 }
 0xc86   :  { %v729_v12 = vadd.f32 1.0, %v1629_v11  ;;  %v41_v11 = vld [vmem:[#allocation2 + $0x60] sm:$0xff] }
 0xc88   :  { %1630 = vrcp.f32 %v729_v12  ;;  %v1556_v12 = vpack.c.bf16 %v41_v11, %v40_v9 }
 0xc92   :  { %v1631_v13 = vpop.eup %1630 }
 0xc93   :  { %v733_v18 = vmul.f32 %v1631_v13, %v643_v2 }
 0xcf6   :  { %v736_v14 = vpop.permute.xlu0 %735 }
 0xcf7   :  { %v738_v17 = vmul.f32 %v1631_v13, %v736_v14  ;;  %v43_v14 = vld [vmem:[#allocation2 + $0x70] sm:$0xff] }
 0xcf9   :  { %740 = vrot.lane.b32.xlu1 %v738_v17, %s1718_s14  ;;  %v44_v17 = vld [vmem:[#allocation2 + $0x78] sm:$0xff] }
 0xd6b   :  { %v741_v19 = vpop.permute.xlu1 %740 }
 0xd6c   :  { %v743_v20 = vadd.f32 %v741_v19, %v733_v18  ;;  %v45_v18 = vld [vmem:[#allocation2 + $0x80] sm:$0xff]  ;;  %v1559_v19 = vpack.c.bf16 %v44_v17, %v43_v14 }
 0xd6e   :  { %1632 = vtanh.f32 %v743_v20 }
 0xd78   :  { %v1633_v52 = vpop.eup %1632 }
 0xd79   :  { %746 = vrot.lane.b32.xlu0 %v1633_v52, %s1717_s0 }
 0xdeb   :  { %v747_v23 = vpop.permute.xlu0 %746 }
 0xdec   :  { %v749_v24 = vmul.f32 %v1631_v13, %v747_v23  ;;  %v47_v23 = vld [vmem:[#allocation2 + $0x90] sm:$0xff] }
 0xdee   :  { %751 = vrot.lane.b32.xlu1 %v749_v24, %s1718_s14  ;;  %v48_v24 = vld [vmem:[#allocation2 + $0x98] sm:$0xff] }
 0xe60   :  { %v752_v25 = vpop.permute.xlu1 %751 }
 0xe61   :  { %1426 = vmatmul.mubr.msk.f32.vlgmr.msra.gmra.mrb[4].mxu1 %vm122_vm1, %v752_v25  ;;  %v1565_v25 = vpack.c.bf16 %v48_v24, %v47_v23 }
 0xe62   :  { %1548 = vmatpush3.bf16.msra.mxu1 %v1771_v16  ;;  %1447 = vmatprep.mubr.msk.f32.mxu1 %vm1715_vm0, %v1716_v22 }
 0xe63   :  { %1549 = vmatprep.subr.bf16.mxu1 %v1714_v15 }
 0xe66   :  { %1551 = vmatpush3.bf16.msra.mxu1 %v1782_v21 }
 0xe67   :  { %1558 = vmatprep.subr.bf16.mxu1 %v1714_v15 }
 0xf34   :  { %v821_v26 = vpop.f32.mrb[4].mxu1 }
 0xf35   :  { %v825_v27 = vadd.f32 %v821_v26, %v1821_v50  ;;  %v1427_v28 = vpop.f32.mrb[5].mxu1  ;;  %v49_v26 = vld [vmem:[#allocation2 + $0xa0] sm:$0xff] }
 0xf37   :  { %1634 = vtanh.f32 %v825_v27  ;;  %v1260_v30 = vmul.f32 -1.442695, %v825_v27  ;;  %v50_v27 = vld [vmem:[#allocation2 + $0xa8] sm:$0xff] }
 0xf39   :  { %1636 = vpow2.f32 %v1260_v30  ;;  %v1568_v30 = vpack.c.bf16 %v50_v27, %v49_v26 }
 0xf41   :  { %v1635_v29 = vpop.eup %1634 }
 0xf42   :  { %835 = vrot.lane.b32.xlu0 %v1635_v29, %s1717_s0 }
 0xf43   :  { %v1637_v16 = vpop.eup %1636 }
 0xf44   :  { %v829_v31 = vadd.f32 1.0, %v1637_v16  ;;  %v51_v16 = vld [vmem:[#allocation2 + $0xb0] sm:$0xff] }
 0xf46   :  { %1638 = vrcp.f32 %v829_v31  ;;  %v52_v31 = vld [vmem:[#allocation2 + $0xb8] sm:$0xff] }
 0xf50   :  { %v1639_v32 = vpop.eup %1638 }
 0xf51   :  { %v833_v21 = vmul.f32 %v1639_v32, %v743_v20  ;;  %v46_v20 = vld [vmem:[#allocation2 + $0x88] sm:$0xff] }
 0xf52   :  { %v1562_v52 = vpack.c.bf16 %v46_v20, %v45_v18 }
 0xfb4   :  { %v836_v33 = vpop.permute.xlu0 %835 }
 0xfb5   :  { %v838_v34 = vmul.f32 %v1639_v32, %v836_v33  ;;  %v53_v33 = vld [vmem:[#allocation2 + $0xc0] sm:$0xff] }
 0xfb7   :  { %840 = vrot.lane.b32.xlu1 %v838_v34, %s1718_s14  ;;  %v54_v34 = vld [vmem:[#allocation2 + $0xc8] sm:$0xff] }
0x1029   :  { %v841_v35 = vpop.permute.xlu1 %840 }
0x102a   :  { %v843_v36 = vadd.f32 %v841_v35, %v833_v21  ;;  %v1574_v21 = vpack.c.bf16 %v54_v34, %v53_v33  ;;  %v55_v35 = vld [vmem:[#allocation2 + $0xd0] sm:$0xff] }
0x102c   :  { %1640 = vtanh.f32 %v843_v36 }
0x1036   :  { %v1641_v50 = vpop.eup %1640 }
0x1037   :  { %846 = vrot.lane.b32.xlu0 %v1641_v50, %s1717_s0 }
0x10a9   :  { %v847_v37 = vpop.permute.xlu0 %846 }
0x10aa   :  { %v849_v38 = vmul.f32 %v1639_v32, %v847_v37  ;;  %v1571_v32 = vpack.c.bf16 %v52_v31, %v51_v16 }
0x10ac   :  { %851 = vrot.lane.b32.xlu1 %v849_v38, %s1718_s14  ;;  %v57_v38 = vld [vmem:[#allocation2 + $0xe0] sm:$0xff] }
0x111e   :  { %v852_v39 = vpop.permute.xlu1 %851 }
0x111f   :  { %1437 = vmatmul.mubr.msk.f32.vlgmr.msra.gmra.mrb[14].mxu0 %vm122_vm1, %v852_v39  ;;  %v58_v39 = vld [vmem:[#allocation2 + $0xe8] sm:$0xff] }
0x1120   :  { %1458 = vmatprep.mubr.msk.f32.mxu0 %vm1715_vm0, %v1716_v22 }
0x11f2   :  { %v921_v40 = vpop.f32.mrb[14].mxu0 }
0x11f3   :  { %v925_v41 = vadd.f32 %v921_v40, %v1827_v56  ;;  %v1438_v42 = vpop.f32.mrb[15].mxu0  ;;  %v1580_v40 = vpack.c.bf16 %v58_v39, %v57_v38 }
0x11f5   :  { %1642 = vtanh.f32 %v925_v41  ;;  %v1262_v44 = vmul.f32 -1.442695, %v925_v41  ;;  %v1265_v41 = vld [vmem:[#allocation2 + $0x68] ss:$0 sm:$0xff] }
0x11f7   :  { %1644 = vpow2.f32 %v1262_v44 }
0x11ff   :  { %v1643_v43 = vpop.eup %1642 }
0x1200   :  { %935 = vrot.lane.b32.xlu0 %v1643_v43, %s1717_s0 }
0x1201   :  { %v1645_v45 = vpop.eup %1644 }
0x1202   :  { %v929_v47 = vadd.f32 1.0, %v1645_v45 }
0x1204   :  { %1646 = vrcp.f32 %v929_v47  ;;  %v1267_v47 = vld [vmem:[#allocation2 + $0xf0] ss:$0 sm:$0xff] }
0x120e   :  { %v1647_v48 = vpop.eup %1646 }
0x120f   :  { %v933_v53 = vmul.f32 %v1647_v48, %v843_v36  ;;  %v56_v36 = vld [vmem:[#allocation2 + $0xd8] sm:$0xff] }
0x1210   :  { %v1577_v50 = vpack.c.bf16 %v56_v36, %v55_v35 }
0x1272   :  { %v936_v49 = vpop.permute.xlu0 %935 }
0x1273   :  { %v938_v51 = vmul.f32 %v1647_v48, %v936_v49  ;;  %v1204_v49 = vld [vmem:[%s1934_s2] sm:$0xff]  ;;  %s1684_s2 = scalar_lea.vmem %s1225_s18, 128 }
0x1274   :  { %p1685_p8 = scmp.ne.s32.totalorder %s1225_s18, %s1684_s2  ;;  %p1690_p10 = scmp.lt.s32.totalorder %s1684_s2, %s1684_s2 }
0x1275   :  { %940 = vrot.lane.b32.xlu1 %v938_v51, %s1718_s14 }
0x1276   :  { %p1691_p11 = por %p1690_p10, %p1689_p9 }
0x1278   :  { %p1692_p12 = pnand %p1691_p11, %p1685_p8 }
0x12e7   :  { %v941_v55 = vpop.permute.xlu1 %940 }
0x12e8   :  { %v943_v57 = vadd.f32 %v941_v55, %v933_v53 }
0x12ea   :  { %1648 = vtanh.f32 %v943_v57 }
0x12f4   :  { %v1649_v56 = vpop.eup %1648 }
0x12f5   :  { %946 = vrot.lane.b32.xlu0 %v1649_v56, %s1717_s0 }
0x1367   :  { %v947_v58 = vpop.permute.xlu0 %946 }
0x1368   :  { %v949_v59 = vmul.f32 %v1647_v48, %v947_v58 }
0x136a   :  { %951 = vrot.lane.b32.xlu1 %v949_v59, %s1718_s14 }
0x13dc   :  { %v952_v60 = vpop.permute.xlu1 %951 }
0x13dd   :  { %1448 = vmatmul.mubr.msk.f32.vlgmr.msra.gmra.mrb[6].mxu1 %vm122_vm1, %v952_v60 }
0x13de   :  { %1493 = vmatprep.mubr.msk.f32.mxu1 %vm1715_vm0, %v1716_v22  ;;  %1560 = vmatpush3.bf16.msra.mxu1 %v1559_v19 }
0x13df   :  { %1561 = vmatprep.subr.bf16.mxu1 %v1714_v15 }
0x13e2   :  { %1563 = vmatpush3.bf16.msra.mxu1 %v1562_v52 }
0x13e3   :  { %1564 = vmatprep.subr.bf16.mxu1 %v1714_v15 }
0x13e6   :  { %1566 = vmatpush3.bf16.msra.mxu1 %v1565_v25 }
0x13e7   :  { %1567 = vmatprep.subr.bf16.mxu1 %v1714_v15 }
0x13ea   :  { %1569 = vmatpush3.bf16.msra.mxu1 %v1568_v30 }
0x13eb   :  { %1570 = vmatprep.subr.bf16.mxu1 %v1714_v15 }
0x13ee   :  { %1572 = vmatpush3.bf16.msra.mxu1 %v1571_v32 }
0x13ef   :  { %1573 = vmatprep.subr.bf16.mxu1 %v1714_v15 }
0x13f2   :  { %1575 = vmatpush3.bf16.msra.mxu1 %v1574_v21 }
0x13f3   :  { %1576 = vmatprep.subr.bf16.mxu1 %v1714_v15 }
0x13f6   :  { %1578 = vmatpush3.bf16.msra.mxu1 %v1577_v50 }
0x13f7   :  { %1579 = vmatprep.subr.bf16.mxu1 %v1714_v15 }
0x13fa   :  { %1581 = vmatpush3.bf16.msra.mxu1 %v1580_v40 }
0x14b0   :  { %v1021_v61 = vpop.f32.mrb[6].mxu1 }
0x14b1   :  { %v1025_v62 = vadd.f32 %v1021_v61, %v1825_v54  ;;  %v1449_v63 = vpop.f32.mrb[7].mxu1  ;;  %v38_v54 = vld [vmem:[#allocation2 + $0x48] sm:$0xff] }
0x14b2   :  { %v1553_v10 = vpack.c.bf16 %v39_v8, %v38_v54 }
0x14b3   :  { %1650 = vtanh.f32 %v1025_v62  ;;  %v1264_v1 = vmul.f32 -1.442695, %v1025_v62 }
0x14b4   :  { %1554 = vmatpush3.bf16.msra.mxu0 %v1553_v10 }
0x14b5   :  { %1652 = vpow2.f32 %v1264_v1  ;;  %1555 = vmatprep.subr.bf16.mxu0 %v1714_v15 }
0x14b8   :  { %1557 = vmatpush3.bf16.msra.mxu0 %v1556_v12 }
0x14bd   :  { %v1651_v0 = vpop.eup %1650 }
0x14be   :  { %1035 = vrot.lane.b32.xlu0 %v1651_v0, %s1717_s0 }
0x14bf   :  { %v1653_v2 = vpop.eup %1652 }
0x14c0   :  { %v1029_v46 = vadd.f32 1.0, %v1653_v2 }
0x14c2   :  { %1654 = vrcp.f32 %v1029_v46 }
0x14cc   :  { %v1655_v3 = vpop.eup %1654 }
0x14cd   :  { %v1033_v6 = vmul.f32 %v1655_v3, %v943_v57 }
0x1530   :  { %v1036_v4 = vpop.permute.xlu0 %1035 }
0x1531   :  { %v1038_v5 = vmul.f32 %v1655_v3, %v1036_v4 }
0x1533   :  { %1040 = vrot.lane.b32.xlu1 %v1038_v5, %s1718_s14 }
0x15a5   :  { %v1041_v22 = vpop.permute.xlu1 %1040 }
0x15a6   :  { %v1043_v7 = vadd.f32 %v1041_v22, %v1033_v6 }
0x15a8   :  { %1656 = vtanh.f32 %v1043_v7 }
0x15b2   :  { %v1657_v13 = vpop.eup %1656 }
0x15b3   :  { %1046 = vrot.lane.b32.xlu0 %v1657_v13, %s1717_s0 }
0x1625   :  { %v1047_v28 = vpop.permute.xlu0 %1046 }
0x1626   :  { %v1049_v29 = vmul.f32 %v1655_v3, %v1047_v28 }
0x1628   :  { %1055 = vrot.lane.b32.xlu1 %v1049_v29, %s1718_s14 }
0x169a   :  { %v1056_v37 = vpop.permute.xlu1 %1055 }
0x169b   :  { %1459 = vmatmul.mubr.msk.f32.vlgmr.msra.gmra.mrb[16].mxu0 %vm122_vm1, %v1056_v37 }
0x176e   :  { %v1125_v42 = vpop.f32.mrb[16].mxu0 }
0x176f   :  { %v1126_v43 = vadd.f32 %v1265_v41, %v1125_v42  ;;  %v1460_v44 = vpop.f32.mrb[17].mxu0 }
0x1771   :  { %v1129_v45 = vmax.f32 %v1126_v43, 0.0 }
0x1773   :  { %1494 = vmatmul.mubr.f32.vlgmr.msra.gmra.mrb[8].mxu1 %v1129_v45 }
0x1846   :  { %v1200_v48 = vpop.f32.mrb[8].mxu1 }
0x1847   :  { %v1201_v15 = vadd.f32 %v1267_v47, %v1200_v48  ;;  %v1495_v51 = vpop.f32.mrb[9].mxu1 }
0x1849   :  { %v1205_v53 = vmul.f32 %v1204_v49, %v1201_v15 }
0x184b   :  { %1206 = vmax.xlane.f32.xlu0 %v1205_v53 }
0x18d8   :  { %v1207_v55 = vpop.xlane.xlu0 %1206 }
0x18d9   :  { %v1208_v57 = vsub.f32 %v1205_v53, %v1207_v55 }
0x18db   :  { %v1209_v56 = vmul.f32 1.442695, %v1208_v57 }
0x18dd   :  { %1658 = vpow2.f32 %v1209_v56 }
0x18e7   :  { %v1659_v58 = vpop.eup %1658 }
0x18e8   :  { %1211 = vadd.xlane.f32.xlu1 %v1659_v58 }
0x1975   :  { %v1212_v59 = vpop.xlane.xlu1 %1211 }
0x1976   :  { %1660 = vlog2.f32 %v1212_v59 }
0x1980   :  { %v1661_v60 = vpop.eup %1660 }
0x1981   :  { %v1214_v61 = vmul.f32 0.6931472, %v1661_v60 }
0x1983   :  { %v1215_v62 = vadd.f32 %v1214_v61, %v1207_v55 }
0x1985   :  { %v1216_v63 = vsub.f32 %v1205_v53, %v1215_v62 }
0x1987   :  { %1217 = vst [vmem:[#allocation5] sm:$0xff] %v1216_v63 }
0x1988   :  { %1695 = shalt.err (!%p1692_p12)
}
0x1989   :  { %s1696_s21 = scalar_lea.hbm %s1935_s3, 128 }
0x198a   :  { %p1697_p13 = scmp.ne.s32.totalorder %s1935_s3, %s1696_s21  ;;  %p1700_p0 = scmp.lt.u32.totalorder %s1696_s21, %s1935_s3 }
0x198c   :  { %p1702_p1 = pnand %p1700_p0, %p1697_p13 }
0x198e   :  { %1705 = shalt.err (!%p1702_p1)
}
0x198f   :  { %1227 = dma.vmem_to_hbm [thread:$0]  %s1225_s18, 128, %s1935_s3, [#allocation4]  }
0x1990   :  { %1708 = dma.done.wait [#allocation4], 128  }
0x1991   :  { %1709 = vsyncadd [#allocation4], 4294967168 }
0x1992   :  { %1231 = vsyncpa [#allocation3], 1 }
0x1993   :  { %1232 = vsyncpa [#allocation4], 1 }

</bundles_post_ra>
